<compile_context>
chip_gen: v7x
topology: tpu7x:2x2x1
jax: 0.10.0
libtpu: 0.0.40
codegen_flags: <defaults>
</compile_context>

<pallas_src>
import jax
import jax.numpy as jnp
from jax.experimental import pallas as pl
from jax.experimental.pallas import tpu as pltpu

_LANE = 128
_SUBLANE = 8
_TARGET_BLOCKS = 8   # >= 2 for v7x megacore; ~8 also restores DMA/compute overlap


def _cdiv(a, b):
    return -(-a // b)


def _round_up(x, m):
    return ((x + m - 1) // m) * m


def _make_partial_kernel(blk_rows, total_rows):
    """Per-block partial SSE kernel factory.

    Blocks are (blk_rows, 128) slices of the flattened, naturally interleaved
    (B, 2) arrays: even lanes = course stream, odd lanes = accelerator stream.
    Emits per-block [course_sse, accel_sse] into a (1, 2) SMEM block.
    """
    ragged = (total_rows % blk_rows) != 0

    def kernel(preds_ref, gt_ref, out_ref):
        # Upcast AFTER the DMA (halves HBM traffic for bf16 inputs; the f32
        # upcast before the subtract is mandatory on v5e's VPU).
        d = preds_ref[...].astype(jnp.float32) - gt_ref[...].astype(jnp.float32)
        if ragged:
            # Only the last block can run past the array; zero its OOB rows.
            # total_rows / blk_rows are Python ints -> traced only when needed.
            row_off = pl.program_id(0) * blk_rows
            row_ids = jax.lax.broadcasted_iota(jnp.int32, d.shape, 0)
            d = jnp.where(row_off + row_ids < total_rows, d, 0.0)
        d2 = d * d
        # Reduce sublanes first so the lane-parity split touches one vreg.
        col = jnp.sum(d2, axis=0, keepdims=True)                   # (1, 128)
        lane = jax.lax.broadcasted_iota(jnp.int32, col.shape, 1)   # (1, 128)
        total = jnp.sum(col)
        course = jnp.sum(jnp.where((lane % 2) == 0, col, 0.0))
        out_ref[0, 0] = course
        out_ref[0, 1] = total - course

    return kernel


def bdd_drive_loss(net_out, batch, scales=None, normalize_outputs=False,
                   max_block_rows=4096, min_pallas_rows=512, use_pallas=None):
    """JAX/Pallas equivalent of BDDDriveLoss.forward."""
    scales = scales or {}
    preds = net_out['preds']
    if normalize_outputs:
        gt_course = batch['course_value_standard']
        gt_accel = batch['accelerator_value_standard']
    else:
        gt_course = batch['course_value']
        gt_accel = batch['accelerator_value']

    course_scale = scales.get('course', 1)
    accel_scale = scales.get('accelerator', 1)

    B = preds.shape[0]
    n_elems = 2 * B
    rows = _cdiv(n_elems, _LANE)

    if use_pallas is None:
        use_pallas = rows >= min_pallas_rows

    if not use_pallas:
        # Small-batch fast path: the whole problem is < a few hundred KiB, the
        # pallas_call launch + wrapper copies dominate -> plain jnp wins.
        dc = preds[:, 0].astype(jnp.float32) - gt_course[:, 0].astype(jnp.float32)
        da = preds[:, 1].astype(jnp.float32) - gt_accel[:, 0].astype(jnp.float32)
        course_loss = jnp.mean(dc * dc) * course_scale
        accel_loss = jnp.mean(da * da) * accel_scale
        return {'loss': course_loss + accel_loss, 'accel_loss': accel_loss,
                'course_loss': course_loss, 'normalize_outputs': normalize_outputs}

    # ---- layout plumbing (minimal; no transpose, no dtype cast) -------------
    preds2 = preds if preds.shape[1] == 2 else preds[:, :2]
    preds_flat = preds2.reshape(-1)                 # row-major flatten = free
    # Same interleaved order as preds2.reshape(-1): [c0, a0, c1, a1, ...].
    gt_flat = jnp.stack([gt_course[:, 0], gt_accel[:, 0]], axis=1).reshape(-1)
    pad = rows * _LANE - n_elems                    # < 128, usually 0
    if pad:
        # Pad both sides identically with zeros -> padded elements give diff 0.
        preds_flat = jnp.pad(preds_flat, (0, pad))
        gt_flat = jnp.pad(gt_flat, (0, pad))
    preds_2d = preds_flat.reshape(rows, _LANE)
    gt_2d = gt_flat.reshape(rows, _LANE)

    # ---- block sizing: aim for ~8 parallel blocks, cap per-step VMEM --------
    if rows < _SUBLANE:
        blk_rows = rows                             # full-dim block (allowed)
    else:
        blk_rows = min(int(max_block_rows),
                       _round_up(max(_cdiv(rows, _TARGET_BLOCKS), _SUBLANE),
                                 _SUBLANE))
    num_blocks = _cdiv(rows, blk_rows)

    kernel = _make_partial_kernel(blk_rows, rows)
    bytes_accessed = rows * _LANE * (preds_2d.dtype.itemsize +
                                     gt_2d.dtype.itemsize) + num_blocks * 2 * 4

    partials = pl.pallas_call(
        kernel,
        out_shape=jax.ShapeDtypeStruct((num_blocks, 2), jnp.float32),
        grid=(num_blocks,),
        in_specs=[
            pl.BlockSpec((blk_rows, _LANE), lambda i: (i, 0)),
            pl.BlockSpec((blk_rows, _LANE), lambda i: (i, 0)),
        ],
        out_specs=pl.BlockSpec((1, 2), lambda i: (i, 0),
                               memory_space=pltpu.MemorySpace.SMEM),
        compiler_params=pltpu.CompilerParams(
            dimension_semantics=("parallel",),
            vmem_limit_bytes=48 * 1024 * 1024),
        cost_estimate=pl.CostEstimate(flops=6 * n_elems, transcendentals=0,
                                      bytes_accessed=int(bytes_accessed)),
    )(preds_2d, gt_2d)

    # ---- finalize: mean over the TRUE batch size, then scales ---------------
    sums = jnp.sum(partials, axis=0)                # (2,) = [course, accel]
    course_loss = sums[0] / B * course_scale
    accel_loss = sums[1] / B * accel_scale
    return {'loss': course_loss + accel_loss, 'accel_loss': accel_loss,
            'course_loss': course_loss, 'normalize_outputs': normalize_outputs}


# ----------------------------- test harness ---------------------------------
def _reference(net_out, batch, scales=None, normalize_outputs=False):
    scales = scales or {}
    preds = net_out['preds'].astype(jnp.float32)
    if normalize_outputs:
        gt_course = batch['course_value_standard']
        gt_accel = batch['accelerator_value_standard']
    else:
        gt_course = batch['course_value']
        gt_accel = batch['accelerator_value']
    gt_course = gt_course.astype(jnp.float32)
    gt_accel = gt_accel.astype(jnp.float32)
    accel = jnp.mean((preds[:, 1] - gt_accel[:, 0]) ** 2) * scales.get('accelerator', 1)
    course = jnp.mean((preds[:, 0] - gt_course[:, 0]) ** 2) * scales.get('course', 1)
    return course + accel, accel, course


def _make_inputs(B, key, dtype=jnp.float32):
    k1, k2, k3 = jax.random.split(key, 3)
    preds = jax.random.normal(k1, (B, 2), dtype=jnp.float32).astype(dtype)
    gt_course = jax.random.normal(k2, (B, 1), dtype=jnp.float32).astype(dtype)
    gt_accel = jax.random.normal(k3, (B, 1), dtype=jnp.float32).astype(dtype)
    return {'preds': preds}, {'course_value': gt_course,
                              'accelerator_value': gt_accel}


def _check(out, ref, name, rtol=1e-4, atol=1e-5):
    loss, accel, course = ref
    assert jnp.allclose(out['loss'], loss, rtol=rtol, atol=atol), name + " loss"
    assert jnp.allclose(out['accel_loss'], accel, rtol=rtol, atol=atol), name + " accel"
    assert jnp.allclose(out['course_loss'], course, rtol=rtol, atol=atol), name + " course"


if __name__ == "__main__":
    key = jax.random.PRNGKey(0)
    scales = {'accelerator': 0.5, 'course': 2.0}

    # 1) Tiny odd batch forced through Pallas: <8-row full-dim block + <128-elem
    #    zero-pad tail.
    net_out, batch = _make_inputs(100, jax.random.fold_in(key, 1))
    out = bdd_drive_loss(net_out, batch, scales=scales, use_pallas=True)
    jax.block_until_ready(out['loss'])
    _check(out, _reference(net_out, batch, scales), "pallas B=100")

    # 2) Ragged grid (rows=12, blk_rows=8 -> partial last block masked in-kernel)
    #    with bf16 inputs (in-kernel upcast before the subtract).
    net_out, batch = _make_inputs(768, jax.random.fold_in(key, 2), dtype=jnp.bfloat16)
    out = bdd_drive_loss(net_out, batch, scales=scales, use_pallas=True)
    jax.block_until_ready(out['loss'])
    _check(out, _reference(net_out, batch, scales), "pallas B=768 bf16")

    # 3) Multi-block "parallel" grid (rows=64 -> 8 blocks of 8 rows), f32.
    net_out, batch = _make_inputs(4096, jax.random.fold_in(key, 3))
    out = bdd_drive_loss(net_out, batch, scales=scales, use_pallas=True)
    jax.block_until_ready(out['loss'])
    _check(out, _reference(net_out, batch, scales), "pallas B=4096")

    # 4) Small batch on the auto path (plain-jnp fast path).
    net_out, batch = _make_inputs(8, jax.random.fold_in(key, 4))
    out = bdd_drive_loss(net_out, batch, scales=scales)
    jax.block_until_ready(out['loss'])
    _check(out, _reference(net_out, batch, scales), "jnp fast path B=8")

    print("KERNEL_OK")
</pallas_src>

<mosaic_0001>
module attributes {stable_mosaic.version = 11 : i64} {
  func.func @kernel(%arg0: i32, %arg1: memref<2x128xf32, #tpu.memory_space<vmem>>, %arg2: memref<2x128xf32, #tpu.memory_space<vmem>>, %arg3: memref<1x2xf32, #tpu.memory_space<smem>>) attributes {dimension_semantics = [#tpu.dimension_semantics<parallel>], iteration_bounds = array<i64: 1>, scalar_prefetch = 0 : i64, scratch_operands = 0 : i64, tpu.core_type = #tpu.core_type<tc>, window_params = [{transform_indices = @transform_0, window_bounds = array<i64: 2, 128>}, {transform_indices = @transform_1, window_bounds = array<i64: 2, 128>}, {transform_indices = @transform_2, window_bounds = array<i64: 1, 2>}]} {
    %c0 = arith.constant 0 : index
    %c0_0 = arith.constant 0 : index
    %0 = vector.load %arg1[%c0, %c0_0] : memref<2x128xf32, #tpu.memory_space<vmem>>, vector<2x128xf32>
    %c0_1 = arith.constant 0 : index
    %c0_2 = arith.constant 0 : index
    %1 = vector.load %arg2[%c0_1, %c0_2] : memref<2x128xf32, #tpu.memory_space<vmem>>, vector<2x128xf32>
    %2 = arith.subf %0, %1 : vector<2x128xf32>
    %3 = arith.mulf %2, %2 : vector<2x128xf32>
    %cst = arith.constant dense<0.000000e+00> : vector<128xf32>
    %4 = vector.multi_reduction <add>, %3, %cst [0] : vector<2x128xf32> to vector<128xf32>
    %5 = vector.shape_cast %4 : vector<128xf32> to vector<1x128xf32>
    %6 = tpu.iota {dimensions = array<i32: 1>} : vector<1x128xi32>
    %7 = vector.shape_cast %5 : vector<1x128xf32> to vector<1x1x128xf32>
    %cst_3 = arith.constant dense<0.000000e+00> : vector<1xf32>
    %8 = vector.multi_reduction <add>, %7, %cst_3 [1, 2] : vector<1x1x128xf32> to vector<1xf32>
    %9 = vector.shape_cast %8 : vector<1xf32> to vector<1x1x1xf32>
    %10 = vector.extract %9[0, 0, 0] : f32 from vector<1x1x1xf32>
    %c2_i32 = arith.constant 2 : i32
    %c0_i32 = arith.constant 0 : i32
    %11 = arith.cmpi eq, %c2_i32, %c0_i32 : i32
    %c1_i32 = arith.constant 1 : i32
    %12 = arith.select %11, %c1_i32, %c2_i32 : i32
    %13 = vector.broadcast %12 : i32 to vector<1x128xi32>
    %14 = arith.remsi %6, %13 : vector<1x128xi32>
    %c0_i32_4 = arith.constant 0 : i32
    %15 = vector.broadcast %c0_i32_4 : i32 to vector<1x128xi32>
    %16 = arith.cmpi ne, %14, %15 : vector<1x128xi32>
    %c0_i32_5 = arith.constant 0 : i32
    %17 = vector.broadcast %c0_i32_5 : i32 to vector<1x128xi32>
    %18 = arith.cmpi slt, %14, %17 : vector<1x128xi32>
    %c0_i32_6 = arith.constant 0 : i32
    %19 = arith.cmpi slt, %12, %c0_i32_6 : i32
    %20 = vector.broadcast %19 : i1 to vector<1x128xi1>
    %21 = vector.broadcast %20 : vector<1x128xi1> to vector<1x128xi1>
    %22 = arith.xori %18, %21 : vector<1x128xi1>
    %23 = arith.andi %22, %16 : vector<1x128xi1>
    %24 = vector.broadcast %12 : i32 to vector<1x128xi32>
    %25 = arith.addi %14, %24 : vector<1x128xi32>
    %26 = arith.select %23, %25, %14 : vector<1x128xi1>, vector<1x128xi32>
    %c0_i32_7 = arith.constant 0 : i32
    %27 = vector.broadcast %c0_i32_7 : i32 to vector<1x128xi32>
    %28 = arith.cmpi eq, %26, %27 : vector<1x128xi32>
    %cst_8 = arith.constant 0.000000e+00 : f32
    %29 = vector.broadcast %cst_8 : f32 to vector<1x128xf32>
    %30 = arith.select %28, %5, %29 : vector<1x128xi1>, vector<1x128xf32>
    %31 = vector.shape_cast %30 : vector<1x128xf32> to vector<1x1x128xf32>
    %cst_9 = arith.constant dense<0.000000e+00> : vector<1xf32>
    %32 = vector.multi_reduction <add>, %31, %cst_9 [1, 2] : vector<1x1x128xf32> to vector<1xf32>
    %33 = vector.shape_cast %32 : vector<1xf32> to vector<1x1x1xf32>
    %34 = vector.extract %33[0, 0, 0] : f32 from vector<1x1x1xf32>
    %c0_10 = arith.constant 0 : index
    %c0_11 = arith.constant 0 : index
    %35 = memref.load %arg3[%c0_10, %c0_11] : memref<1x2xf32, #tpu.memory_space<smem>>
    memref.store %34, %arg3[%c0_10, %c0_11] : memref<1x2xf32, #tpu.memory_space<smem>>
    %36 = arith.subf %10, %34 : f32
    %c0_12 = arith.constant 0 : index
    %c1 = arith.constant 1 : index
    %37 = memref.load %arg3[%c0_12, %c1] : memref<1x2xf32, #tpu.memory_space<smem>>
    memref.store %36, %arg3[%c0_12, %c1] : memref<1x2xf32, #tpu.memory_space<smem>>
    return
  }
  func.func @transform_0(%arg0: i32) -> (i32, i32) {
    %c0_i32 = arith.constant 0 : i32
    %c0_i32_0 = arith.constant 0 : i32
    return %arg0, %c0_i32 : i32, i32
  }
  func.func @transform_1(%arg0: i32) -> (i32, i32) {
    %c0_i32 = arith.constant 0 : i32
    %c0_i32_0 = arith.constant 0 : i32
    return %arg0, %c0_i32 : i32, i32
  }
  func.func @transform_2(%arg0: i32) -> (i32, i32) {
    %c0_i32 = arith.constant 0 : i32
    %c0_i32_0 = arith.constant 0 : i32
    return %arg0, %c0_i32 : i32, i32
  }
}

</mosaic_0001>

<bundles_post_ra>
// kernel: tpu_custom_call.1
= control target key start
LH: loop header
LB: loop body
LE: loop exit
PB: predicated region body
PF: predicated region fallthrough
CT: control target
= control target key end

     0   :  { %7 = vsyncpa [#allocation3], 0  ;;  %s178_s0 = inlined_call_operand.hbm [shape: f32[2,128], index: 0, kind: input, shape index: {}]   ;;  %s179_s1 = inlined_call_operand.vmem [shape: f32[2,128], index: 1, kind: input, shape index: {}]   ;;  %s180_s2 = inlined_call_operand.hbm [shape: f32[1,2], index: 2, kind: output, shape index: {}]  }
   0x1   :  { %8 = vsyncpa [#allocation4], 0  ;;  %s134_s9 = smov [#allocation2]   ;;  %s98_s13 = scalar_lea.hbm %s178_s0, 32 }
   0x2   :  { %s15_s10 = sshll.u32 %s134_s9, 4  ;;  %p99_p0 = scmp.ne.s32.totalorder %s178_s0, %s98_s13  ;;  %s16_s10 = int_to_ptr.vmem [resolvable:$true] %s15_s10 }
   0x3   :  { %p102_p1 = scmp.lt.u32.totalorder %s98_s13, %s178_s0 }
   0x5   :  { %p104_p2 = pnand %p102_p1, %p99_p0 }
   0x7   :  { %107 = shalt.err (!%p104_p2)
}
   0x8   :  { %s108_s18 = scalar_lea.vmem %s16_s10, 32  ;;  %p113_p4 = scmp.lt.s32.totalorder %s16_s10, %s16_s10 }
   0x9   :  { %p109_p3 = scmp.ne.s32.totalorder %s16_s10, %s108_s18  ;;  %p114_p5 = scmp.lt.s32.totalorder %s108_s18, %s108_s18 }
   0xb   :  { %p115_p6 = por %p114_p5, %p113_p4 }
   0xd   :  { %p116_p7 = pnand %p115_p6, %p109_p3 }
   0xf   :  { %119 = shalt.err (!%p116_p7)
}
  0x10   :  { %18 = dma.hbm_to_vmem [thread:$0]  %s178_s0, 32, %s16_s10, [#allocation3]  }
  0x11   :  { %130 = dma.done.wait [#allocation3], 32  }
  0x12   :  { %131 = vsyncadd [#allocation3], 4294967264  ;;  %v24_v0 = vld [vmem:[#allocation2] sm:$0x3]  ;;  %vm28_vm0 = vcmask 1041408   ;;  %v36_v4 = vlaneseq  ;;  %vm38_vm1 = vcmask 1040384  }
  0x13   :  { %v25_v1 = vld [vmem:[%s179_s1] sm:$0x3]  ;;  %s120_s26 = scalar_lea.hbm %s180_s2, 16 }
  0x14   :  { %v26_v2 = vsub.f32 %v24_v0, %v25_v1  ;;  %v37_v7 = vand.u32 127, %v36_v4  ;;  %p121_p8 = scmp.ne.s32.totalorder %s180_s2, %s120_s26  ;;  %p124_p9 = scmp.lt.u32.totalorder %s120_s26, %s180_s2 }
  0x16   :  { %v27_v3 = vmul.f32 %v26_v2, %v26_v2  ;;  %v53_v10 = vand.u32 1, %v37_v7  ;;  %p126_p10 = pnand %p124_p9, %p121_p8 }
  0x18   :  { %v29_v5 = vsel %vm28_vm0, %v27_v3, 0.0  ;;  %vm61_vm2 = vcmp.eq.s32.totalorder %v53_v10, 0 }
  0x19   :  { %v30_v6 = vrot.slane %v29_v5, 4 }
  0x1b   :  { %v31_v8 = vadd.f32 %v30_v6, %v29_v5 }
  0x1d   :  { %v32_v9 = vrot.slane %v31_v8, 2 }
  0x1f   :  { %v33_v11 = vadd.f32 %v32_v9, %v31_v8 }
  0x21   :  { %v34_v12 = vrot.slane %v33_v11, 1 }
  0x23   :  { %v35_v13 = vadd.f32 %v34_v12, %v33_v11 }
  0x25   :  { %v39_v14 = vsel %vm38_vm1, %v35_v13, 0.0  ;;  %v62_v15 = vsel %vm61_vm2, %v35_v13, 0.0 }
  0x26   :  { %40 = vadd.xlane.f32.xlu0 %v39_v14  ;;  %v63_v16 = vsel %vm38_vm1, %v62_v15, 0.0 }
  0x2a   :  { %64 = vadd.xlane.f32.xlu0 %v63_v16 }
  0xb3   :  { %v41_v17 = vpop.xlane.xlu0 %40 }
  0xb4   :  { %v42_v18 = vrot.slane %v41_v17, 4 }
  0xb6   :  { %v43_v19 = vadd.f32 %v42_v18, %v41_v17 }
  0xb7   :  { %v65_v20 = vpop.xlane.xlu0 %64 }
  0xb8   :  { %v44_v21 = vrot.slane %v43_v19, 2  ;;  %v66_v22 = vrot.slane %v65_v20, 4 }
  0xba   :  { %v67_v23 = vadd.f32 %v66_v22, %v65_v20  ;;  %v45_v24 = vadd.f32 %v44_v21, %v43_v19 }
  0xbc   :  { %v68_v25 = vrot.slane %v67_v23, 2  ;;  %v46_v26 = vrot.slane %v45_v24, 1 }
  0xbe   :  { %v69_v27 = vadd.f32 %v68_v25, %v67_v23  ;;  %v47_v28 = vadd.f32 %v46_v26, %v45_v24 }
  0xc0   :  { %92 = vpush %v47_v28  ;;  %v70_v29 = vrot.slane %v69_v27, 1 }
  0xc2   :  { %v71_v30 = vadd.f32 %v70_v29, %v69_v27 }
  0xc4   :  { %94 = vpush %v71_v30 }
  0xf1   :  { %s93_s0 = spop %92 }
  0xf5   :  { %s95_s1 = spop %94 }
  0xf6   :  { %74 = sst [smem:[#allocation5]] %s95_s1 }
  0xf7   :  { %s75_s23 = ssub.f32 %s93_s0, %s95_s1 }
  0xf9   :  { %77 = sst [smem:[#allocation5 + $0x1]] %s75_s23 }
  0xfa   :  { %129 = shalt.err (!%p126_p10)
}
  0xfb   :  { %s135_s3 = smov [#allocation5]  }
  0xfc   :  { %85 = dma.smem_to_hbm %s135_s3, 16, %s180_s2, [#allocation4]  }
  0xfd   :  { %132 = dma.done.wait [#allocation4], 16  }
  0xfe   :  { %133 = vsyncadd [#allocation4], 4294967280 }
  0xff   :  { %89 = sfence }
 0x100   :  { %90 = vsyncpa [#allocation3], 1 }
 0x101   :  { %91 = vsyncpa [#allocation4], 1 }

</bundles_post_ra>
